<compile_context>
chip_gen: v6e
topology: v6e:2x2x1
jax: 0.10.0
libtpu: 0.0.40
codegen_flags: <defaults>
</compile_context>

<pallas_src>
import jax
import jax.numpy as jnp
from jax.experimental import pallas as pl
from jax.experimental.pallas import tpu as pltpu


def _round_up(x: int, m: int) -> int:
    return ((x + m - 1) // m) * m


def _cdiv(a: int, b: int) -> int:
    return -(-a // b)


# --------------------------------------------------------------------------
# Fast path: whole problem in one VMEM-resident block, no grid.
# --------------------------------------------------------------------------
def _small_linear_kernel(x_ref, w_ref, b_ref, o_ref):
    # x_ref: [B, In], w_ref: [In, Out] (pre-transposed), b_ref: [1, Out].
    o_ref[...] = (
        jnp.dot(x_ref[...], w_ref[...], preferred_element_type=jnp.float32)
        + b_ref[...]
    ).astype(o_ref.dtype)


# --------------------------------------------------------------------------
# Tiled path: (M, N, K) grid, accumulate directly into the resident f32
# output block (no scratch), bias added in the last-K epilogue.
# --------------------------------------------------------------------------
def _tiled_linear_kernel(x_ref, w_ref, b_ref, o_ref):
    # x_ref: [tm, tk], w_ref: [tk, tn], b_ref: [1, tn], o_ref: [tm, tn] f32.
    k = pl.program_id(2)

    @pl.when(k == 0)
    def _():
        o_ref[...] = jnp.zeros_like(o_ref)

    o_ref[...] += jnp.dot(x_ref[...], w_ref[...],
                          preferred_element_type=jnp.float32)

    @pl.when(k == pl.num_programs(2) - 1)
    def _():
        o_ref[...] += b_ref[...]


def linear_regression_forward(x, weight, bias, *, use_bf16_inputs: bool = False):
    """x: [B, In], weight: [Out, In] (torch layout), bias: [Out]. Returns f32 [B, Out].

    use_bf16_inputs: feed the MXU bf16 operands (f32 accumulation kept) — the
    recommended mode for v6e/v7x throughput; default f32 for tight accuracy.
    """
    B, In = x.shape
    Out, In_w = weight.shape
    assert In_w == In and bias.shape == (Out,)

    in_dtype = jnp.bfloat16 if use_bf16_inputs else jnp.float32
    x_c = x.astype(in_dtype)
    wt = weight.T.astype(in_dtype)              # [In, Out] — one-time transpose
    b2 = bias.reshape(1, Out).astype(jnp.float32)

    # ---------------- fast path for small problems ----------------
    total_bytes = 4 * (B * In + In * Out + B * Out + Out)
    if total_bytes <= 4 * 1024 * 1024:
        return pl.pallas_call(
            _small_linear_kernel,
            out_shape=jax.ShapeDtypeStruct((B, Out), jnp.float32),
        )(x_c, wt, b2)

    # ---------------- tiled path ----------------
    sub = 16 if use_bf16_inputs else 8          # sublane alignment for tm
    tm = min(512, _round_up(B, sub))
    tn = min(512, _round_up(Out, 128))

    # Choose tk (<=1024, multiple of 128) to minimize K-tail zero padding.
    rk = _round_up(In, 128)
    nk = _cdiv(rk, 1024)
    tk = _round_up(_cdiv(rk, nk), 128)
    Kp = tk * nk

    if Kp != In:
        # Only the contraction (K) tail is zero-padded: padded K columns must
        # be exactly zero for the reduction to be correct.  M/N tails are
        # handled by the cdiv grid (OOB output writes are dropped).
        x_c = jnp.pad(x_c, ((0, 0), (0, Kp - In)))
        wt = jnp.pad(wt, ((0, Kp - In), (0, 0)))

    grid = (_cdiv(B, tm), _cdiv(Out, tn), nk)

    bytes_per_in = 2 if use_bf16_inputs else 4
    cost = pl.CostEstimate(
        flops=2 * B * In * Out,
        transcendentals=0,
        bytes_accessed=bytes_per_in * (B * Kp + Kp * Out) + 4 * (B * Out + Out),
    )

    return pl.pallas_call(
        _tiled_linear_kernel,
        out_shape=jax.ShapeDtypeStruct((B, Out), jnp.float32),
        grid_spec=pltpu.PrefetchScalarGridSpec(
            num_scalar_prefetch=0,
            grid=grid,
            in_specs=[
                pl.BlockSpec((tm, tk), lambda i, j, k: (i, k)),   # X tile
                pl.BlockSpec((tk, tn), lambda i, j, k: (k, j)),   # W^T tile [K, N]
                pl.BlockSpec((1, tn), lambda i, j, k: (0, j)),    # bias tile
            ],
            out_specs=pl.BlockSpec((tm, tn), lambda i, j, k: (i, j)),
        ),
        compiler_params=pltpu.CompilerParams(
            dimension_semantics=("parallel", "parallel", "arbitrary"),
            vmem_limit_bytes=32 * 1024 * 1024,
        ),
        cost_estimate=cost,
    )(x_c, wt, b2)


if __name__ == "__main__":
    key = jax.random.PRNGKey(0)
    kx, kw, kb, k2 = jax.random.split(key, 4)

    # --- Case 1: the module's actual (tiny) shape -> single-block fast path ---
    batch, input_size, output_size = 8, 32, 16
    x = jax.random.normal(kx, (batch, input_size), dtype=jnp.float32)
    bound = 1.0 / (input_size ** 0.5)   # torch.nn.Linear default init range
    weight = jax.random.uniform(kw, (output_size, input_size),
                                minval=-bound, maxval=bound, dtype=jnp.float32)
    bias = jax.random.uniform(kb, (output_size,),
                              minval=-bound, maxval=bound, dtype=jnp.float32)

    out = jax.block_until_ready(linear_regression_forward(x, weight, bias))
    ref = x @ weight.T + bias
    assert out.shape == (batch, output_size)
    assert jnp.allclose(out, ref, atol=1e-5, rtol=1e-5)

    # --- Case 2: larger shape -> tiled MXU path (partial M/N tiles, K tail pad) ---
    B2, In2, Out2 = 640, 1152, 640
    kx2, kw2, kb2 = jax.random.split(k2, 3)
    x2 = jax.random.normal(kx2, (B2, In2), dtype=jnp.float32)
    bound2 = 1.0 / (In2 ** 0.5)
    w2 = jax.random.uniform(kw2, (Out2, In2),
                            minval=-bound2, maxval=bound2, dtype=jnp.float32)
    b2 = jax.random.uniform(kb2, (Out2,),
                            minval=-bound2, maxval=bound2, dtype=jnp.float32)

    out2 = jax.block_until_ready(linear_regression_forward(x2, w2, b2))
    ref2 = x2 @ w2.T + b2
    assert out2.shape == (B2, Out2)
    # Loose tolerance: f32-on-MXU matmul precision semantics differ slightly
    # from the XLA reference; both are far below this bound in practice.
    assert jnp.allclose(out2, ref2, atol=1e-2, rtol=1e-2)

    print("KERNEL_OK")
</pallas_src>

<mosaic_0001>
module attributes {stable_mosaic.version = 11 : i64} {
  func.func @_small_linear_kernel(%arg0: memref<8x32xf32, #tpu.memory_space<vmem>>, %arg1: memref<32x16xf32, #tpu.memory_space<vmem>>, %arg2: memref<1x16xf32, #tpu.memory_space<vmem>>, %arg3: memref<8x16xf32, #tpu.memory_space<vmem>>) attributes {dimension_semantics = [], scalar_prefetch = 0 : i64, scratch_operands = 0 : i64, tpu.core_type = #tpu.core_type<tc>} {
    %c0 = arith.constant 0 : index
    %c0_0 = arith.constant 0 : index
    %0 = vector.load %arg0[%c0, %c0_0] : memref<8x32xf32, #tpu.memory_space<vmem>>, vector<8x32xf32>
    %c0_1 = arith.constant 0 : index
    %c0_2 = arith.constant 0 : index
    %1 = vector.load %arg1[%c0_1, %c0_2] : memref<32x16xf32, #tpu.memory_space<vmem>>, vector<32x16xf32>
    %cst = arith.constant dense<0.000000e+00> : vector<8x16xf32>
    %2 = tpu.matmul %0, %1, %cst {dimension_numbers = #tpu.dot_dimension_numbers<[1], [0], [0], [1], [0, 0, 1, 1], [], []>} : vector<8x32xf32>, vector<32x16xf32>, vector<8x16xf32> -> vector<8x16xf32>
    %c0_3 = arith.constant 0 : index
    %c0_4 = arith.constant 0 : index
    %3 = vector.load %arg2[%c0_3, %c0_4] : memref<1x16xf32, #tpu.memory_space<vmem>>, vector<1x16xf32>
    %4 = vector.broadcast %3 : vector<1x16xf32> to vector<8x16xf32>
    %5 = arith.addf %2, %4 : vector<8x16xf32>
    %c0_5 = arith.constant 0 : index
    %c0_6 = arith.constant 0 : index
    %6 = vector.load %arg3[%c0_5, %c0_6] : memref<8x16xf32, #tpu.memory_space<vmem>>, vector<8x16xf32>
    tpu.vector_store %arg3[%c0_5, %c0_6], %5 {strides = array<i32>} : memref<8x16xf32, #tpu.memory_space<vmem>>, vector<8x16xf32>,
    return
  }
}

</mosaic_0001>

<bundles_post_ra>
// kernel: tpu_custom_call.1
= control target key start
LH: loop header
LB: loop body
LE: loop exit
PB: predicated region body
PF: predicated region fallthrough
CT: control target
= control target key end

     0   :  { %v160_v1 = vmov 0.0   ;;  %vm161_vm0 = vmmov 0   ;;  %s204_s0 = inlined_call_operand.vmem [shape: f32[8,32], index: 0, kind: input, shape index: {}]   ;;  %s205_s1 = inlined_call_operand.vmem [shape: f32[32,16], index: 1, kind: input, shape index: {}]   ;;  %s206_s2 = inlined_call_operand.vmem [shape: f32[1,16], index: 2, kind: input, shape index: {}]   ;;  %s207_s3 = inlined_call_operand.hbm [shape: f32[8,16], index: 3, kind: output, shape index: {}]  }
   0x1   :  { %v19_v0 = vld [vmem:[%s205_s1 + $0x18] sm:$0xff]  ;;  %124 = vmatprep.subr.mxu0 %v160_v1  ;;  %v18_v2 = vld [vmem:[%s205_s1 + $0x10] sm:$0xff]  ;;  %132 = vmatprep.mubr.msk.f32.mxu0 %vm161_vm0, %v160_v1 }
   0x2   :  { %125 = vmatpush3.msra.mxu0 %v19_v0 }
   0x3   :  { %8 = vsyncpa [#allocation3], 0  ;;  %126 = vmatprep.subr.mxu0 %v160_v1  ;;  %v17_v3 = vld [vmem:[%s205_s1 + $0x8] sm:$0xff]  ;;  %v16_v4 = vld [vmem:[%s205_s1] sm:$0xff]  ;;  %vm27_vm1 = vcmask 261120   ;;  %s162_s24 = smov [#allocation2]  }
   0x4   :  { %127 = vmatpush3.msra.mxu0 %v18_v2  ;;  %v15_v5 = vld [vmem:[%s204_s0] sm:$0xff]  ;;  %s109_s25 = sshll.u32 %s162_s24, 4  ;;  %vm101_vm2 = vcmask 130048   ;;  %s110_s25 = int_to_ptr.vmem [resolvable:$true] %s109_s25 }
   0x5   :  { %128 = vmatprep.subr.mxu0 %v160_v1  ;;  %v117_v6 = vld [vmem:[%s206_s2] ss:$0 sm:$0xff]  ;;  %s138_s1 = scalar_lea.vmem %s110_s25, 128  ;;  %p143_p1 = scmp.lt.s32.totalorder %s110_s25, %s110_s25 }
   0x6   :  { %129 = vmatpush3.msra.mxu0 %v17_v3  ;;  %p139_p0 = scmp.ne.s32.totalorder %s110_s25, %s138_s1  ;;  %p144_p2 = scmp.lt.s32.totalorder %s138_s1, %s138_s1 }
   0x7   :  { %130 = vmatprep.subr.mxu0 %v160_v1 }
   0x8   :  { %131 = vmatpush3.msra.mxu0 %v16_v4  ;;  %p145_p3 = por %p144_p2, %p143_p1 }
   0x9   :  { %133 = vmatmul.mubr.msk.f32.vlgmr.msra.gmra.mxu0 %vm27_vm1, %v15_v5 }
   0xa   :  { %p146_p4 = pnand %p145_p3, %p139_p0 }
  0xc9   :  { %v97_v7 = vpop.f32.mrf.mxu0 }
  0xca   :  { %v98_v8 = vadd.f32 %v117_v6, %v97_v7 }
  0xcb   :  { %v134_v9 = vpop.f32.mrf.mxu0 }
  0xcc   :  { %102 = vst.msk [vmem:[#allocation2] sm:$0xff] %vm101_vm2, %v98_v8 }
  0xcd   :  { %149 = shalt.err (!%p146_p4)
}
  0xce   :  { %112 = dma.vmem_to_hbm [thread:$0]  %s110_s25, 128, %s207_s3, [#allocation3]  }
  0xcf   :  { %158 = dma.done.wait [#allocation3], 128  }
  0xd0   :  { %159 = vsyncadd [#allocation3], 4294967168 }
  0xd1   :  { %116 = vsyncpa [#allocation3], 1 }

</bundles_post_ra>
